<compile_context>
chip_gen: v6e
topology: v6e:2x2x1
jax: 0.10.0
libtpu: 0.0.40
codegen_flags: <defaults>
</compile_context>

<pallas_src>
import jax
import jax.numpy as jnp
from jax.experimental import pallas as pl
from jax.experimental.pallas import tpu as pltpu

_LANES = 128
_SMALL_SINGLE_BLOCK_BYTES = 2 * 1024 * 1024  # single-block cap for ragged shapes


def _tanh_kernel(x_ref, o_ref):
    # Elementwise tanh on one VMEM tile (EUP path).  The cast is a no-op for
    # floating inputs (bf16 stays native bf16 on v6e/v7x); integer inputs are
    # widened to f32 in-kernel, avoiding a separate wrapper astype HBM pass.
    o_ref[...] = jnp.tanh(x_ref[...].astype(o_ref.dtype))


def _round_up(a: int, m: int) -> int:
    return -(-a // m) * m


def _tpu_tuning():
    """Returns (tensorcores_per_chip, target_block_bytes, vmem_limit_bytes)."""
    kind = ""
    try:
        kind = jax.devices()[0].device_kind.lower()
    except Exception:
        pass
    if "7" in kind:
        # v7x: 2 TCs/chip, only 64 MiB physical VMEM, ~3.2 TB/s HBM -> bigger
        # blocks to amortize per-step overhead; stay <= ~48 MiB scoped.
        return 2, 8 * 1024 * 1024, 48 * 1024 * 1024
    if "v4" in kind or "v5p" in kind:
        # Megacore generations: 2 TCs/chip, 128 MiB VMEM.
        return 2, 4 * 1024 * 1024, 40 * 1024 * 1024
    # v5e / v6e: 1 TC/chip, 128 MiB physical VMEM.
    return 1, 4 * 1024 * 1024, 40 * 1024 * 1024


def _pick_block_rows(rows, sub_mult, bytes_per_row, target_block_bytes, num_cores):
    """Rows per block: large blocks; >= 2 blocks per TensorCore on dual-TC chips."""
    target_rows = max(
        sub_mult,
        (target_block_bytes // max(bytes_per_row, 1)) // sub_mult * sub_mult,
    )
    block_rows = min(rows, target_rows)
    if num_cores > 1:
        min_blocks = 2 * num_cores  # >= 2 blocks per core -> per-core pipelining
        if rows >= min_blocks * sub_mult:
            per_block = (rows // min_blocks) // sub_mult * sub_mult
            block_rows = min(block_rows, max(per_block, sub_mult))
    if block_rows < rows:
        block_rows = max(sub_mult, (block_rows // sub_mult) * sub_mult)
    return block_rows


def _tanh_2d(x2d, out_dtype, block_rows, vmem_limit_bytes):
    rows, cols = x2d.shape
    grid = (pl.cdiv(rows, block_rows),)  # Pallas masks the ragged final block
    n = rows * cols
    bytes_accessed = n * (
        jnp.dtype(x2d.dtype).itemsize + jnp.dtype(out_dtype).itemsize
    )
    return pl.pallas_call(
        _tanh_kernel,
        out_shape=jax.ShapeDtypeStruct((rows, cols), out_dtype),
        grid_spec=pltpu.PrefetchScalarGridSpec(
            num_scalar_prefetch=0,
            grid=grid,
            in_specs=[pl.BlockSpec((block_rows, cols), lambda i: (i, 0))],
            out_specs=pl.BlockSpec((block_rows, cols), lambda i: (i, 0)),
        ),
        compiler_params=pltpu.CompilerParams(
            # TODO(synk): on v7x, evaluate pltpu.CORE_PARALLEL here and verify
            # in xprof that both TensorCores stream; "parallel" is the safe,
            # portable default across v5e/v6e/v7x.
            dimension_semantics=("parallel",),
            vmem_limit_bytes=vmem_limit_bytes,
        ),
        cost_estimate=pl.CostEstimate(
            flops=0, transcendentals=n, bytes_accessed=bytes_accessed
        ),
    )(x2d)


def tt_tanh_v2(x, clamp_omega: bool = False):
    """Pallas implementation of TTTanhV2.forward: tanh(x)."""
    del clamp_omega  # unused in the PyTorch forward
    orig_shape = x.shape
    in_dtype = x.dtype
    out_dtype = in_dtype if jnp.issubdtype(in_dtype, jnp.floating) else jnp.float32
    in_itemsize = jnp.dtype(in_dtype).itemsize
    out_itemsize = jnp.dtype(out_dtype).itemsize
    itemsize = max(in_itemsize, out_itemsize)
    # Stricter sublane-packing multiple of the two dtypes (f32->8, bf16->16, i8->32).
    sub_mult = max(8, 32 // min(in_itemsize, out_itemsize))

    n = x.size
    if n == 0:
        return jnp.zeros(orig_shape, out_dtype)

    num_cores, target_block_bytes, vmem_limit_bytes = _tpu_tuning()

    if n % _LANES == 0:
        # Common NN case: free contiguous reshape to a lane-dense (rows, 128)
        # slab.  Zero pad/slice HBM passes.
        rows = n // _LANES
        bytes_per_row = _LANES * itemsize
        block_rows = _pick_block_rows(
            rows, sub_mult, bytes_per_row, target_block_bytes, num_cores
        )
        out2d = _tanh_2d(x.reshape(rows, _LANES), out_dtype, block_rows,
                         vmem_limit_bytes)
        return out2d.reshape(orig_shape)

    # Unaligned total: keep the original trailing dim as the full-extent lane
    # dim (always a legal block shape) so no pad/slice passes are needed.
    if x.ndim >= 2:
        cols = orig_shape[-1]
        rows = n // cols
    else:
        cols, rows = n, 1
    cols_padded = _round_up(cols, _LANES)
    bytes_per_row = cols_padded * itemsize
    small_single = _round_up(rows, sub_mult) * bytes_per_row <= _SMALL_SINGLE_BLOCK_BYTES
    row_block_fits = sub_mult * bytes_per_row <= target_block_bytes
    low_lane_waste = cols_padded <= 2 * cols

    if small_single or (row_block_fits and low_lane_waste):
        block_rows = _pick_block_rows(
            rows, sub_mult, bytes_per_row, target_block_bytes, num_cores
        )
        out2d = _tanh_2d(x.reshape(rows, cols), out_dtype, block_rows,
                         vmem_limit_bytes)
        return out2d.reshape(orig_shape)

    # Rare fallback (large tensor with a tiny, non-128-aligned trailing dim):
    # pad the flat view to a lane multiple and slice the tail off afterwards.
    # Costs ~2 extra HBM passes but only triggers on pathological shapes.
    x_flat = x.reshape(-1)
    x_flat = jnp.pad(x_flat, (0, _round_up(n, _LANES) - n))
    rows = x_flat.size // _LANES
    bytes_per_row = _LANES * itemsize
    block_rows = _pick_block_rows(
        rows, sub_mult, bytes_per_row, target_block_bytes, num_cores
    )
    out2d = _tanh_2d(x_flat.reshape(rows, _LANES), out_dtype, block_rows,
                     vmem_limit_bytes)
    return out2d.reshape(-1)[:n].reshape(orig_shape)


if __name__ == "__main__":
    key = jax.random.PRNGKey(0)
    k0, k1, k2 = jax.random.split(key, 3)

    # Main case: NCHW f32 input, matching the PyTorch conv convention.
    x = jax.random.normal(k0, (2, 4, 16, 16), dtype=jnp.float32)
    out = tt_tanh_v2(x)
    jax.block_until_ready(out)
    assert out.shape == x.shape and out.dtype == x.dtype
    assert jnp.allclose(out, jnp.tanh(x), atol=1e-6, rtol=1e-6)

    # Non-128-aligned shape: exercises the pad-free ragged 2-D path.
    x_odd = jax.random.normal(k1, (3, 5, 7), dtype=jnp.float32)
    out_odd = tt_tanh_v2(x_odd)
    jax.block_until_ready(out_odd)
    assert out_odd.shape == x_odd.shape and out_odd.dtype == x_odd.dtype
    assert jnp.allclose(out_odd, jnp.tanh(x_odd), atol=1e-6, rtol=1e-6)

    # bf16 input: exercises dtype-aware tiling and native bf16 compute.
    x_bf16 = jax.random.normal(k2, (2, 8, 16, 16), dtype=jnp.bfloat16)
    out_bf16 = tt_tanh_v2(x_bf16)
    jax.block_until_ready(out_bf16)
    assert out_bf16.shape == x_bf16.shape and out_bf16.dtype == x_bf16.dtype
    assert jnp.allclose(
        out_bf16.astype(jnp.float32),
        jnp.tanh(x_bf16).astype(jnp.float32),
        atol=1e-2,
        rtol=1e-2,
    )

    print("KERNEL_OK")
</pallas_src>

<mosaic_0001>
module attributes {stable_mosaic.version = 11 : i64} {
  func.func @_tanh_kernel(%arg0: i32, %arg1: memref<16x128xf32, #tpu.memory_space<vmem>>, %arg2: memref<16x128xf32, #tpu.memory_space<vmem>>) attributes {dimension_semantics = [#tpu.dimension_semantics<parallel>], iteration_bounds = array<i64: 1>, scalar_prefetch = 0 : i64, scratch_operands = 0 : i64, tpu.core_type = #tpu.core_type<tc>, window_params = [{transform_indices = @transform_0, window_bounds = array<i64: 16, 128>}, {transform_indices = @transform_1, window_bounds = array<i64: 16, 128>}]} {
    %c0 = arith.constant 0 : index
    %c0_0 = arith.constant 0 : index
    %0 = vector.load %arg1[%c0, %c0_0] : memref<16x128xf32, #tpu.memory_space<vmem>>, vector<16x128xf32>
    %1 = math.tanh %0 : vector<16x128xf32>
    %c0_1 = arith.constant 0 : index
    %c0_2 = arith.constant 0 : index
    %2 = vector.load %arg2[%c0_1, %c0_2] : memref<16x128xf32, #tpu.memory_space<vmem>>, vector<16x128xf32>
    tpu.vector_store %arg2[%c0_1, %c0_2], %1 {strides = array<i32>} : memref<16x128xf32, #tpu.memory_space<vmem>>, vector<16x128xf32>,
    return
  }
  func.func @transform_0(%arg0: i32) -> (i32, i32) {
    %c0_i32 = arith.constant 0 : i32
    %c0_i32_0 = arith.constant 0 : i32
    return %arg0, %c0_i32 : i32, i32
  }
  func.func @transform_1(%arg0: i32) -> (i32, i32) {
    %c0_i32 = arith.constant 0 : i32
    %c0_i32_0 = arith.constant 0 : i32
    return %arg0, %c0_i32 : i32, i32
  }
}

</mosaic_0001>

<bundles_post_ra>
// kernel: tpu_custom_call.1
= control target key start
LH: loop header
LB: loop body
LE: loop exit
PB: predicated region body
PF: predicated region fallthrough
CT: control target
= control target key end

     0   :  { %6 = vsyncpa [#allocation3], 0  ;;  %s118_s0 = inlined_call_operand.hbm [shape: f32[16,128], index: 0, kind: input, shape index: {}]   ;;  %s119_s1 = inlined_call_operand.hbm [shape: f32[16,128], index: 1, kind: output, shape index: {}]  }
   0x1   :  { %7 = vsyncpa [#allocation4], 0  ;;  %s98_s6 = smov [#allocation2]  }
   0x2   :  { %s13_s7 = sshll.u32 %s98_s6, 4  ;;  %s14_s7 = int_to_ptr.vmem [resolvable:$true] %s13_s7 }
   0x3   :  { %s62_s8 = scalar_lea.vmem %s14_s7, 256  ;;  %p67_p1 = scmp.lt.s32.totalorder %s14_s7, %s14_s7 }
   0x4   :  { %p63_p0 = scmp.ne.s32.totalorder %s14_s7, %s62_s8  ;;  %p68_p2 = scmp.lt.s32.totalorder %s62_s8, %s62_s8 }
   0x6   :  { %p69_p3 = por %p68_p2, %p67_p1 }
   0x8   :  { %p70_p4 = pnand %p69_p3, %p63_p0 }
   0xa   :  { %73 = shalt.err (!%p70_p4)
}
   0xb   :  { %s99_s9 = smov 128   ;;  %s100_s10 = smov 8  }
   0xc   :  { %19 = dma.hbm_to_vmem [thread:$0]  %s118_s0, 256, %s14_s7, [#allocation3], %s99_s9, %s99_s9, %s100_s10  }
   0xd   :  { %94 = dma.done.wait [#allocation3], 256  }
   0xe   :  { %95 = vsyncadd [#allocation3], 4294967040  ;;  %v23_v0 = vld [vmem:[#allocation2] sm:$0xff]  ;;  %v24_v1 = vld [vmem:[#allocation2 + $0x8] sm:$0xff]  ;;  %s101_s13 = smov [#allocation5]  }
   0xf   :  { %50 = vtanh.f32 %v23_v0  ;;  %s34_s14 = sshll.u32 %s101_s13, 4  ;;  %s35_s14 = int_to_ptr.vmem [resolvable:$true] %s34_s14 }
  0x10   :  { %52 = vtanh.f32 %v24_v1  ;;  %s74_s15 = scalar_lea.vmem %s35_s14, 256  ;;  %p79_p6 = scmp.lt.s32.totalorder %s35_s14, %s35_s14 }
  0x11   :  { %p75_p5 = scmp.ne.s32.totalorder %s35_s14, %s74_s15  ;;  %p80_p7 = scmp.lt.s32.totalorder %s74_s15, %s74_s15 }
  0x13   :  { %p81_p8 = por %p80_p7, %p79_p6 }
  0x15   :  { %p82_p9 = pnand %p81_p8, %p75_p5 }
  0x1c   :  { %v51_v2 = vpop.eup %50 }
  0x1d   :  { %v53_v3 = vpop.eup %52  ;;  %27 = vst [vmem:[#allocation5] sm:$0xff] %v51_v2 }
  0x1e   :  { %28 = vst [vmem:[#allocation5 + $0x8] sm:$0xff] %v53_v3 }
  0x1f   :  { %85 = shalt.err (!%p82_p9)
}
  0x20   :  { %40 = dma.vmem_to_hbm [thread:$0]  %s35_s14, 256, %s119_s1, [#allocation4], %s99_s9, %s99_s9, %s100_s10  }
  0x21   :  { %96 = dma.done.wait [#allocation4], 256  }
  0x22   :  { %97 = vsyncadd [#allocation4], 4294967040 }
  0x23   :  { %44 = vsyncpa [#allocation3], 1 }
  0x24   :  { %45 = vsyncpa [#allocation4], 1 }

</bundles_post_ra>
